<compile_context>
chip_gen: v5e
topology: v5e:2x2
jax: 0.10.0
libtpu: 0.0.40
codegen_flags: <defaults>
</compile_context>

<pallas_src>
import jax
import jax.numpy as jnp
from jax.experimental import pallas as pl
from jax.experimental.pallas import tpu as pltpu

_LANE = 128  # lane width; 256-alignment of feature dims can help the 2x256^2 MXU on
             # v6e/v7x for large layers, kept at 128 here to minimize padding.


def _round_up(v: int, m: int) -> int:
    return -(-v // m) * m


def _usable_vmem_bytes() -> int:
    """Generation-aware VMEM budget (leave headroom for compiler scratch)."""
    try:
        cap = int(pltpu.get_tpu_info().vmem_capacity_bytes)
    except Exception:
        cap = 64 << 20  # conservative default = v7x per-core VMEM
    return (cap * 85) // 100


def _better_linear_kernel(x_ref, wt_ref, b_ref, o_ref):
    """out = leaky_relu( x @ (W^T * bn_scale) + bn_shift )."""
    h = jnp.dot(x_ref[...], wt_ref[...], preferred_element_type=jnp.float32)  # f32 acc
    h = h + b_ref[...]                     # BN shift (scale already folded into W^T)
    o_ref[...] = jnp.maximum(h, 0.01 * h).astype(o_ref.dtype)  # LeakyReLU(0.01)


def fold_bn_params(w, gamma, beta, running_mean, running_var, *, eps=1e-5,
                   compute_dtype=jnp.bfloat16, feature_align=_LANE):
    """Fold eval-mode BatchNorm1d into a pre-transposed, padded, cast weight + shift.

    Call once per layer for inference and reuse the result across forward passes.
    Returns (wt_p, shift_p, t_out): wt_p is (in_p, out_p) in compute_dtype, shift_p is
    (1, out_p) f32, t_out is the output-column tile (out_p is a multiple of t_out).
    """
    out_c, in_c = w.shape
    scale = gamma.astype(jnp.float32) / jnp.sqrt(running_var.astype(jnp.float32) + eps)
    shift = beta.astype(jnp.float32) - running_mean.astype(jnp.float32) * scale

    in_p = _round_up(in_c, feature_align)
    w_item = jnp.dtype(compute_dtype).itemsize

    # Output-column tile: keep one (single-buffered) weight tile within ~half the
    # usable VMEM so the streaming x / out tiles still fit.
    usable = _usable_vmem_bytes()
    max_w_bytes = usable // 2
    t_out = _round_up(out_c, feature_align)
    while in_p * t_out * w_item > max_w_bytes and t_out > feature_align:
        t_out = max(feature_align, _round_up(t_out // 2, feature_align))
    out_p = _round_up(out_c, t_out)

    wt = (w.astype(jnp.float32).T * scale[None, :]).astype(compute_dtype)  # (in_c, out_c)
    if (in_p, out_p) != (in_c, out_c):
        wt = jnp.zeros((in_p, out_p), compute_dtype).at[:in_c, :out_c].set(wt)
    if out_p != out_c:
        shift = jnp.zeros((out_p,), jnp.float32).at[:out_c].set(shift)
    return wt, shift.reshape(1, out_p), t_out


def better_linear_apply(x, wt_p, shift_p, t_out, out_c, *, tile_n=512, out_dtype=None):
    """Run the fused kernel with pre-folded params (see fold_bn_params)."""
    n, in_c = x.shape
    in_p, out_p = wt_p.shape
    assert in_c <= in_p and out_c <= out_p and out_p % t_out == 0
    compute_dtype = wt_p.dtype
    out_dtype = x.dtype if out_dtype is None else out_dtype

    x_item = jnp.dtype(compute_dtype).itemsize
    w_item = jnp.dtype(compute_dtype).itemsize
    o_item = jnp.dtype(out_dtype).itemsize
    usable = _usable_vmem_bytes()

    single_buffer_w = (out_p == t_out)  # constant weight index map -> no double buffer

    # Row tile: as large as fits the VMEM budget (conservatively assume 2 weight bufs).
    tn = min(_round_up(tile_n, 8), _round_up(n, 8))

    def _needed(tn_, w_bufs_):
        return (w_bufs_ * in_p * t_out * w_item       # weight tile(s)
                + w_bufs_ * t_out * 4                 # BN shift tile(s)
                + 2 * tn_ * in_p * x_item             # x tiles (double-buffered)
                + 2 * tn_ * t_out * o_item)           # out tiles (double-buffered)

    while _needed(tn, 2) > usable and tn > 8:
        tn = max(8, _round_up(tn // 2, 8))
    n_p = _round_up(n, tn)

    # Pad + cast x to the compute dtype (elide the copy when already aligned).
    x_c = x.astype(compute_dtype)
    if (n_p, in_p) != (n, in_c):
        x_p = jnp.zeros((n_p, in_p), compute_dtype).at[:n, :in_c].set(x_c)
    else:
        x_p = x_c

    num_j = out_p // t_out   # weight-column tiles (outer grid axis)
    num_i = n_p // tn        # row tiles (inner grid axis -> x streams, weight resident)

    def _run(single_buffered):
        w_kwargs = dict(pipeline_mode=pl.Buffered(1)) if single_buffered else {}
        needed = _needed(tn, 1 if single_buffered else 2)
        vmem_limit = int(min(usable, max(needed + needed // 2 + (1 << 20), 16 << 20)))
        return pl.pallas_call(
            _better_linear_kernel,
            out_shape=jax.ShapeDtypeStruct((n_p, out_p), out_dtype),
            grid=(num_j, num_i),
            in_specs=[
                pl.BlockSpec((tn, in_p), lambda j, i: (i, 0)),                   # x (streamed)
                pl.BlockSpec((in_p, t_out), lambda j, i: (0, j), **w_kwargs),    # W^T*scale (resident per j)
                pl.BlockSpec((1, t_out), lambda j, i: (0, j), **w_kwargs),       # BN shift
            ],
            out_specs=pl.BlockSpec((tn, t_out), lambda j, i: (i, j)),
            compiler_params=pltpu.CompilerParams(
                dimension_semantics=("parallel", "parallel"),
                vmem_limit_bytes=vmem_limit,
            ),
        )(x_p, wt_p, shift_p)

    if single_buffer_w:
        try:
            out = _run(True)
        except Exception:
            out = _run(False)  # pl.Buffered(1) unsupported -> default double buffering
    else:
        out = _run(False)

    if (n_p, out_p) != (n, out_c):
        out = out[:n, :out_c]
    return out


def better_linear(x, w, gamma, beta, running_mean, running_var, *, eps=1e-5,
                  compute_dtype=jnp.bfloat16, tile_n=512, out_dtype=None):
    """One-shot convenience wrapper (folds BN every call; prefer fold_bn_params +
    better_linear_apply for inference with static weights)."""
    wt_p, shift_p, t_out = fold_bn_params(
        w, gamma, beta, running_mean, running_var, eps=eps, compute_dtype=compute_dtype)
    return better_linear_apply(x, wt_p, shift_p, t_out, w.shape[0],
                               tile_n=tile_n, out_dtype=out_dtype)


def better_linear_ref(x, w, gamma, beta, running_mean, running_var, eps=1e-5):
    """Pure-JAX reference (eval-mode PyTorch semantics)."""
    h = x @ w.T
    h = gamma * (h - running_mean) / jnp.sqrt(running_var + eps) + beta
    return jnp.where(h >= 0.0, h, 0.01 * h)


if __name__ == "__main__":
    key = jax.random.PRNGKey(0)
    k_x, k_w, k_g, k_b = jax.random.split(key, 4)

    batch, in_c, out_c = 8, 32, 64
    x = jax.random.normal(k_x, (batch, in_c), jnp.float32)

    # PyTorch Linear default init: U(-1/sqrt(fan_in), 1/sqrt(fan_in)).
    bound = 1.0 / (in_c ** 0.5)
    w = jax.random.uniform(k_w, (out_c, in_c), jnp.float32, -bound, bound)

    # Deterministic, non-trivial BatchNorm params / running stats.
    gamma = 1.0 + 0.1 * jax.random.normal(k_g, (out_c,), jnp.float32)
    beta = 0.1 * jax.random.normal(k_b, (out_c,), jnp.float32)
    running_mean = 0.05 * jnp.arange(out_c, dtype=jnp.float32)
    running_var = 1.0 + 0.01 * jnp.arange(out_c, dtype=jnp.float32)

    ref = better_linear_ref(x, w, gamma, beta, running_mean, running_var)

    # f32 compute path: tight check of the fused math (BN folding, LeakyReLU, padding).
    out_f32 = jax.block_until_ready(
        better_linear(x, w, gamma, beta, running_mean, running_var,
                      compute_dtype=jnp.float32))
    assert out_f32.shape == (batch, out_c)
    assert jnp.allclose(out_f32, ref, atol=1e-5, rtol=1e-5), "f32 path mismatch vs reference"

    # Default bf16 fast path via the hoisted (fold-once) API: looser tolerance.
    wt_p, shift_p, t_out = fold_bn_params(w, gamma, beta, running_mean, running_var)
    out_bf16 = jax.block_until_ready(
        better_linear_apply(x, wt_p, shift_p, t_out, out_c))
    assert out_bf16.shape == (batch, out_c)
    assert jnp.allclose(out_bf16, ref, atol=5e-2, rtol=5e-2), "bf16 path mismatch vs reference"

    print("KERNEL_OK")
</pallas_src>

<mosaic_0001>
module attributes {stable_mosaic.version = 11 : i64} {
  func.func @_better_linear_kernel(%arg0: i32, %arg1: i32, %arg2: memref<8x128xf32, #tpu.memory_space<vmem>>, %arg3: memref<128x128xf32, #tpu.memory_space<vmem>>, %arg4: memref<1x128xf32, #tpu.memory_space<vmem>>, %arg5: memref<8x128xf32, #tpu.memory_space<vmem>>) attributes {dimension_semantics = [#tpu.dimension_semantics<parallel>, #tpu.dimension_semantics<parallel>], iteration_bounds = array<i64: 1, 1>, scalar_prefetch = 0 : i64, scratch_operands = 0 : i64, tpu.core_type = #tpu.core_type<tc>, window_params = [{transform_indices = @transform_0, window_bounds = array<i64: 8, 128>}, {pipeline_mode = #tpu.pipeline_mode<synchronous>, transform_indices = @transform_1, window_bounds = array<i64: 128, 128>}, {pipeline_mode = #tpu.pipeline_mode<synchronous>, transform_indices = @transform_2, window_bounds = array<i64: 1, 128>}, {transform_indices = @transform_3, window_bounds = array<i64: 8, 128>}]} {
    %c0 = arith.constant 0 : index
    %c0_0 = arith.constant 0 : index
    %0 = vector.load %arg2[%c0, %c0_0] : memref<8x128xf32, #tpu.memory_space<vmem>>, vector<8x128xf32>
    %c0_1 = arith.constant 0 : index
    %c0_2 = arith.constant 0 : index
    %1 = vector.load %arg3[%c0_1, %c0_2] : memref<128x128xf32, #tpu.memory_space<vmem>>, vector<128x128xf32>
    %cst = arith.constant dense<0.000000e+00> : vector<8x128xf32>
    %2 = tpu.matmul %0, %1, %cst {dimension_numbers = #tpu.dot_dimension_numbers<[1], [0], [0], [1], [0, 0, 1, 1], [], []>} : vector<8x128xf32>, vector<128x128xf32>, vector<8x128xf32> -> vector<8x128xf32>
    %c0_3 = arith.constant 0 : index
    %c0_4 = arith.constant 0 : index
    %3 = vector.load %arg4[%c0_3, %c0_4] : memref<1x128xf32, #tpu.memory_space<vmem>>, vector<1x128xf32>
    %4 = vector.broadcast %3 : vector<1x128xf32> to vector<8x128xf32>
    %5 = arith.addf %2, %4 : vector<8x128xf32>
    %cst_5 = arith.constant 0.00999999977 : f32
    %6 = vector.broadcast %cst_5 : f32 to vector<8x128xf32>
    %7 = arith.mulf %6, %5 : vector<8x128xf32>
    %8 = arith.maximumf %5, %7 : vector<8x128xf32>
    %c0_6 = arith.constant 0 : index
    %c0_7 = arith.constant 0 : index
    %9 = vector.load %arg5[%c0_6, %c0_7] : memref<8x128xf32, #tpu.memory_space<vmem>>, vector<8x128xf32>
    tpu.vector_store %arg5[%c0_6, %c0_7], %8 {strides = array<i32>} : memref<8x128xf32, #tpu.memory_space<vmem>>, vector<8x128xf32>,
    return
  }
  func.func @transform_0(%arg0: i32, %arg1: i32) -> (i32, i32) {
    %c0_i32 = arith.constant 0 : i32
    %c0_i32_0 = arith.constant 0 : i32
    return %arg1, %c0_i32 : i32, i32
  }
  func.func @transform_1(%arg0: i32, %arg1: i32) -> (i32, i32) {
    %c0_i32 = arith.constant 0 : i32
    %c0_i32_0 = arith.constant 0 : i32
    return %c0_i32, %arg0 : i32, i32
  }
  func.func @transform_2(%arg0: i32, %arg1: i32) -> (i32, i32) {
    %c0_i32 = arith.constant 0 : i32
    %c0_i32_0 = arith.constant 0 : i32
    return %c0_i32, %arg0 : i32, i32
  }
  func.func @transform_3(%arg0: i32, %arg1: i32) -> (i32, i32) {
    %c0_i32 = arith.constant 0 : i32
    return %arg1, %arg0 : i32, i32
  }
}

module attributes {stable_mosaic.version = 11 : i64} {
  func.func @_better_linear_kernel(%arg0: i32, %arg1: i32, %arg2: memref<8x128xf32, #tpu.memory_space<vmem>>, %arg3: memref<128x128xf32, #tpu.memory_space<vmem>>, %arg4: memref<1x128xf32, #tpu.memory_space<vmem>>, %arg5: memref<8x128xf32, #tpu.memory_space<vmem>>) attributes {dimension_semantics = [#tpu.dimension_semantics<parallel>, #tpu.dimension_semantics<parallel>], iteration_bounds = array<i64: 1, 1>, scalar_prefetch = 0 : i64, scratch_operands = 0 : i64, tpu.core_type = #tpu.core_type<tc>, window_params = [{transform_indices = @transform_0, window_bounds = array<i64: 8, 128>}, {transform_indices = @transform_1, window_bounds = array<i64: 128, 128>}, {transform_indices = @transform_2, window_bounds = array<i64: 1, 128>}, {transform_indices = @transform_3, window_bounds = array<i64: 8, 128>}]} {
    %c0 = arith.constant 0 : index
    %c0_0 = arith.constant 0 : index
    %0 = vector.load %arg2[%c0, %c0_0] : memref<8x128xf32, #tpu.memory_space<vmem>>, vector<8x128xf32>
    %c0_1 = arith.constant 0 : index
    %c0_2 = arith.constant 0 : index
    %1 = vector.load %arg3[%c0_1, %c0_2] : memref<128x128xf32, #tpu.memory_space<vmem>>, vector<128x128xf32>
    %cst = arith.constant dense<0.000000e+00> : vector<8x128xf32>
    %2 = tpu.matmul %0, %1, %cst {dimension_numbers = #tpu.dot_dimension_numbers<[1], [0], [0], [1], [0, 0, 1, 1], [], []>} : vector<8x128xf32>, vector<128x128xf32>, vector<8x128xf32> -> vector<8x128xf32>
    %c0_3 = arith.constant 0 : index
    %c0_4 = arith.constant 0 : index
    %3 = vector.load %arg4[%c0_3, %c0_4] : memref<1x128xf32, #tpu.memory_space<vmem>>, vector<1x128xf32>
    %4 = vector.broadcast %3 : vector<1x128xf32> to vector<8x128xf32>
    %5 = arith.addf %2, %4 : vector<8x128xf32>
    %cst_5 = arith.constant 0.00999999977 : f32
    %6 = vector.broadcast %cst_5 : f32 to vector<8x128xf32>
    %7 = arith.mulf %6, %5 : vector<8x128xf32>
    %8 = arith.maximumf %5, %7 : vector<8x128xf32>
    %c0_6 = arith.constant 0 : index
    %c0_7 = arith.constant 0 : index
    %9 = vector.load %arg5[%c0_6, %c0_7] : memref<8x128xf32, #tpu.memory_space<vmem>>, vector<8x128xf32>
    tpu.vector_store %arg5[%c0_6, %c0_7], %8 {strides = array<i32>} : memref<8x128xf32, #tpu.memory_space<vmem>>, vector<8x128xf32>,
    return
  }
  func.func @transform_0(%arg0: i32, %arg1: i32) -> (i32, i32) {
    %c0_i32 = arith.constant 0 : i32
    %c0_i32_0 = arith.constant 0 : i32
    return %arg1, %c0_i32 : i32, i32
  }
  func.func @transform_1(%arg0: i32, %arg1: i32) -> (i32, i32) {
    %c0_i32 = arith.constant 0 : i32
    %c0_i32_0 = arith.constant 0 : i32
    return %c0_i32, %arg0 : i32, i32
  }
  func.func @transform_2(%arg0: i32, %arg1: i32) -> (i32, i32) {
    %c0_i32 = arith.constant 0 : i32
    %c0_i32_0 = arith.constant 0 : i32
    return %c0_i32, %arg0 : i32, i32
  }
  func.func @transform_3(%arg0: i32, %arg1: i32) -> (i32, i32) {
    %c0_i32 = arith.constant 0 : i32
    return %arg1, %arg0 : i32, i32
  }
}

</mosaic_0001>

<bundles_post_ra>
// kernel: tpu_custom_call.1
= control target key start
LH: loop header
LB: loop body
LE: loop exit
PB: predicated region body
PF: predicated region fallthrough
CT: control target
= control target key end

     0   :  { %8 = vsyncpa [#allocation3], 0  ;;  %s228_s0 = inlined_call_operand.hbm [shape: f32[8,128], index: 0, kind: input, shape index: {}]   ;;  %s229_s1 = inlined_call_operand.hbm [shape: f32[128,128], index: 1, kind: input, shape index: {}]   ;;  %s230_s2 = inlined_call_operand.vmem [shape: f32[1,128], index: 2, kind: input, shape index: {}]   ;;  %s231_s3 = inlined_call_operand.hbm [shape: f32[8,128], index: 3, kind: output, shape index: {}]  }
   0x1   :  { %9 = vsyncpa [#allocation6], 0 }
   0x2   :  { %10 = vsyncpa [#allocation4], 0  ;;  %s16_s14 = sshll.u32 %s228_s0, 4  ;;  %s191_s15 = smov [#allocation2]   ;;  %s17_s14 = int_to_ptr.hbm [resolvable:$true] %s16_s14 }
   0x3   :  { %s18_s16 = sshll.u32 %s191_s15, 4  ;;  %s26_s19 = sshll.u32 %s229_s1, 4  ;;  %s19_s16 = int_to_ptr.vmem [resolvable:$true] %s18_s16  ;;  %s27_s19 = int_to_ptr.hbm [resolvable:$true] %s26_s19 }
   0x4   :  { %21 = dma.hbm_to_vmem [thread:$0]  %s17_s14, 128, %s19_s16, [#allocation3]  }
   0x5   :  { %s192_s20 = smov [#allocation5]   ;;  %s193_s22 = smov 128  }
   0x6   :  { %s28_s21 = sshll.u32 %s192_s20, 4  ;;  %s194_s23 = smov 8   ;;  %s29_s21 = int_to_ptr.vmem [resolvable:$true] %s28_s21 }
   0x7   :  { %34 = dma.hbm_to_vmem [thread:$0]  %s27_s19, 2048, %s29_s21, [#allocation6], %s193_s22, %s193_s22, %s194_s23  }
   0x8   :  { %185 = dma.done.wait [#allocation3], 128  }
   0x9   :  { %186 = vsyncadd [#allocation3], 4294967168 }
   0xa   :  { %187 = dma.done.wait [#allocation6], 2048  }
   0xb   :  { %188 = vsyncadd [#allocation6], 4294965248  ;;  %v61_v0 = vld [vmem:[#allocation5 + $0x78] sm:$0xff]  ;;  %v60_v1 = vld [vmem:[#allocation5 + $0x70] sm:$0xff]  ;;  %s195_s24 = smov [#allocation7]   ;;  %s96_s28 = sshll.u32 %s231_s3, 4  ;;  %s97_s28 = int_to_ptr.hbm [resolvable:$true] %s96_s28 }
   0xc   :  { %66 = vmatpush.msra.mxu0 %v61_v0  ;;  %v59_v2 = vld [vmem:[#allocation5 + $0x68] sm:$0xff]  ;;  %v58_v3 = vld [vmem:[#allocation5 + $0x60] sm:$0xff]  ;;  %v57_v4 = vld [vmem:[#allocation5 + $0x58] sm:$0xff]  ;;  %s94_s25 = sshll.u32 %s195_s24, 4  ;;  %s95_s25 = int_to_ptr.vmem [resolvable:$true] %s94_s25 }
   0xd   :  { %v56_v5 = vld [vmem:[#allocation5 + $0x50] sm:$0xff]  ;;  %v55_v6 = vld [vmem:[#allocation5 + $0x48] sm:$0xff]  ;;  %v54_v7 = vld [vmem:[#allocation5 + $0x40] sm:$0xff] }
   0xe   :  { %67 = vmatpush.msra.mxu0 %v60_v1  ;;  %v53_v8 = vld [vmem:[#allocation5 + $0x38] sm:$0xff]  ;;  %v52_v9 = vld [vmem:[#allocation5 + $0x30] sm:$0xff]  ;;  %v51_v10 = vld [vmem:[#allocation5 + $0x28] sm:$0xff] }
   0xf   :  { %v50_v11 = vld [vmem:[#allocation5 + $0x20] sm:$0xff]  ;;  %v49_v12 = vld [vmem:[#allocation5 + $0x18] sm:$0xff]  ;;  %v48_v13 = vld [vmem:[#allocation5 + $0x10] sm:$0xff] }
  0x10   :  { %68 = vmatpush.msra.mxu0 %v59_v2  ;;  %v47_v14 = vld [vmem:[#allocation5 + $0x8] sm:$0xff]  ;;  %v46_v15 = vld [vmem:[#allocation5] sm:$0xff]  ;;  %v45_v16 = vld [vmem:[#allocation2] sm:$0xff] }
  0x11   :  { %v112_v17 = vld [vmem:[%s230_s2] ss:$0 sm:$0xff] }
  0x12   :  { %69 = vmatpush.msra.mxu0 %v58_v3 }
  0x14   :  { %70 = vmatpush.msra.mxu0 %v57_v4 }
  0x16   :  { %71 = vmatpush.msra.mxu0 %v56_v5 }
  0x18   :  { %72 = vmatpush.msra.mxu0 %v55_v6 }
  0x1a   :  { %73 = vmatpush.msra.mxu0 %v54_v7 }
  0x1c   :  { %74 = vmatpush.msra.mxu0 %v53_v8 }
  0x1e   :  { %75 = vmatpush.msra.mxu0 %v52_v9 }
  0x20   :  { %76 = vmatpush.msra.mxu0 %v51_v10 }
  0x22   :  { %77 = vmatpush.msra.mxu0 %v50_v11 }
  0x24   :  { %78 = vmatpush.msra.mxu0 %v49_v12 }
  0x26   :  { %79 = vmatpush.msra.mxu0 %v48_v13 }
  0x28   :  { %80 = vmatpush.msra.mxu0 %v47_v14 }
  0x2a   :  { %81 = vmatpush.msra.mxu0 %v46_v15 }
  0x2b   :  { %82 = vmatmul.f32.vlgmr.msra.gmra.mxu0 %v45_v16 }
  0xa8   :  { %v83_v18 = vpop.f32.mrf.mxu0 }
  0xa9   :  { %v84_v19 = vadd.f32 %v112_v17, %v83_v18 }
  0xab   :  { %v86_v20 = vmul.f32 0.01, %v84_v19 }
  0xad   :  { %v87_v21 = vmax.f32 %v84_v19, %v86_v20 }
  0xaf   :  { %88 = vst [vmem:[#allocation7] sm:$0xff] %v87_v21 }
  0xb0   :  { %99 = dma.vmem_to_hbm [thread:$0]  %s95_s25, 128, %s97_s28, [#allocation4]  }
  0xb1   :  { %189 = dma.done.wait [#allocation4], 128  }
  0xb2   :  { %190 = vsyncadd [#allocation4], 4294967168 }
  0xb3   :  { %104 = vsyncpa [#allocation3], 1 }
  0xb4   :  { %105 = vsyncpa [#allocation6], 1 }
  0xb5   :  { %106 = vsyncpa [#allocation4], 1 }

// kernel: tpu_custom_call.1
= control target key start
LH: loop header
LB: loop body
LE: loop exit
PB: predicated region body
PF: predicated region fallthrough
CT: control target
= control target key end

     0   :  { %8 = vsyncpa [#allocation3], 0  ;;  %s228_s0 = inlined_call_operand.hbm [shape: f32[8,128], index: 0, kind: input, shape index: {}]   ;;  %s229_s1 = inlined_call_operand.hbm [shape: f32[128,128], index: 1, kind: input, shape index: {}]   ;;  %s230_s2 = inlined_call_operand.vmem [shape: f32[1,128], index: 2, kind: input, shape index: {}]   ;;  %s231_s3 = inlined_call_operand.hbm [shape: f32[8,128], index: 3, kind: output, shape index: {}]  }
   0x1   :  { %9 = vsyncpa [#allocation6], 0 }
   0x2   :  { %10 = vsyncpa [#allocation4], 0  ;;  %s16_s14 = sshll.u32 %s228_s0, 4  ;;  %s191_s15 = smov [#allocation2]   ;;  %s17_s14 = int_to_ptr.hbm [resolvable:$true] %s16_s14 }
   0x3   :  { %s18_s16 = sshll.u32 %s191_s15, 4  ;;  %s26_s19 = sshll.u32 %s229_s1, 4  ;;  %s19_s16 = int_to_ptr.vmem [resolvable:$true] %s18_s16  ;;  %s27_s19 = int_to_ptr.hbm [resolvable:$true] %s26_s19 }
   0x4   :  { %21 = dma.hbm_to_vmem [thread:$0]  %s17_s14, 128, %s19_s16, [#allocation3]  }
   0x5   :  { %s192_s20 = smov [#allocation5]   ;;  %s193_s22 = smov 128  }
   0x6   :  { %s28_s21 = sshll.u32 %s192_s20, 4  ;;  %s194_s23 = smov 8   ;;  %s29_s21 = int_to_ptr.vmem [resolvable:$true] %s28_s21 }
   0x7   :  { %34 = dma.hbm_to_vmem [thread:$0]  %s27_s19, 2048, %s29_s21, [#allocation6], %s193_s22, %s193_s22, %s194_s23  }
   0x8   :  { %185 = dma.done.wait [#allocation3], 128  }
   0x9   :  { %186 = vsyncadd [#allocation3], 4294967168 }
   0xa   :  { %187 = dma.done.wait [#allocation6], 2048  }
   0xb   :  { %188 = vsyncadd [#allocation6], 4294965248  ;;  %v61_v0 = vld [vmem:[#allocation5 + $0x78] sm:$0xff]  ;;  %v60_v1 = vld [vmem:[#allocation5 + $0x70] sm:$0xff]  ;;  %s195_s24 = smov [#allocation7]   ;;  %s96_s28 = sshll.u32 %s231_s3, 4  ;;  %s97_s28 = int_to_ptr.hbm [resolvable:$true] %s96_s28 }
   0xc   :  { %66 = vmatpush.msra.mxu0 %v61_v0  ;;  %v59_v2 = vld [vmem:[#allocation5 + $0x68] sm:$0xff]  ;;  %v58_v3 = vld [vmem:[#allocation5 + $0x60] sm:$0xff]  ;;  %v57_v4 = vld [vmem:[#allocation5 + $0x58] sm:$0xff]  ;;  %s94_s25 = sshll.u32 %s195_s24, 4  ;;  %s95_s25 = int_to_ptr.vmem [resolvable:$true] %s94_s25 }
   0xd   :  { %v56_v5 = vld [vmem:[#allocation5 + $0x50] sm:$0xff]  ;;  %v55_v6 = vld [vmem:[#allocation5 + $0x48] sm:$0xff]  ;;  %v54_v7 = vld [vmem:[#allocation5 + $0x40] sm:$0xff] }
   0xe   :  { %67 = vmatpush.msra.mxu0 %v60_v1  ;;  %v53_v8 = vld [vmem:[#allocation5 + $0x38] sm:$0xff]  ;;  %v52_v9 = vld [vmem:[#allocation5 + $0x30] sm:$0xff]  ;;  %v51_v10 = vld [vmem:[#allocation5 + $0x28] sm:$0xff] }
   0xf   :  { %v50_v11 = vld [vmem:[#allocation5 + $0x20] sm:$0xff]  ;;  %v49_v12 = vld [vmem:[#allocation5 + $0x18] sm:$0xff]  ;;  %v48_v13 = vld [vmem:[#allocation5 + $0x10] sm:$0xff] }
  0x10   :  { %68 = vmatpush.msra.mxu0 %v59_v2  ;;  %v47_v14 = vld [vmem:[#allocation5 + $0x8] sm:$0xff]  ;;  %v46_v15 = vld [vmem:[#allocation5] sm:$0xff]  ;;  %v45_v16 = vld [vmem:[#allocation2] sm:$0xff] }
  0x11   :  { %v112_v17 = vld [vmem:[%s230_s2] ss:$0 sm:$0xff] }
  0x12   :  { %69 = vmatpush.msra.mxu0 %v58_v3 }
  0x14   :  { %70 = vmatpush.msra.mxu0 %v57_v4 }
  0x16   :  { %71 = vmatpush.msra.mxu0 %v56_v5 }
  0x18   :  { %72 = vmatpush.msra.mxu0 %v55_v6 }
  0x1a   :  { %73 = vmatpush.msra.mxu0 %v54_v7 }
  0x1c   :  { %74 = vmatpush.msra.mxu0 %v53_v8 }
  0x1e   :  { %75 = vmatpush.msra.mxu0 %v52_v9 }
  0x20   :  { %76 = vmatpush.msra.mxu0 %v51_v10 }
  0x22   :  { %77 = vmatpush.msra.mxu0 %v50_v11 }
  0x24   :  { %78 = vmatpush.msra.mxu0 %v49_v12 }
  0x26   :  { %79 = vmatpush.msra.mxu0 %v48_v13 }
  0x28   :  { %80 = vmatpush.msra.mxu0 %v47_v14 }
  0x2a   :  { %81 = vmatpush.msra.mxu0 %v46_v15 }
  0x2b   :  { %82 = vmatmul.f32.vlgmr.msra.gmra.mxu0 %v45_v16 }
  0xa8   :  { %v83_v18 = vpop.f32.mrf.mxu0 }
  0xa9   :  { %v84_v19 = vadd.f32 %v112_v17, %v83_v18 }
  0xab   :  { %v86_v20 = vmul.f32 0.01, %v84_v19 }
  0xad   :  { %v87_v21 = vmax.f32 %v84_v19, %v86_v20 }
  0xaf   :  { %88 = vst [vmem:[#allocation7] sm:$0xff] %v87_v21 }
  0xb0   :  { %99 = dma.vmem_to_hbm [thread:$0]  %s95_s25, 128, %s97_s28, [#allocation4]  }
  0xb1   :  { %189 = dma.done.wait [#allocation4], 128  }
  0xb2   :  { %190 = vsyncadd [#allocation4], 4294967168 }
  0xb3   :  { %104 = vsyncpa [#allocation3], 1 }
  0xb4   :  { %105 = vsyncpa [#allocation6], 1 }
  0xb5   :  { %106 = vsyncpa [#allocation4], 1 }

</bundles_post_ra>
